<compile_context>
chip_gen: v7x
topology: tpu7x:2x2x1
jax: 0.10.0
libtpu: 0.0.40
codegen_flags: <defaults>
</compile_context>

<pallas_src>
import jax
import jax.numpy as jnp
from jax.experimental import pallas as pl
from jax.experimental.pallas import tpu as pltpu

LANE = 128
N_LAYERS = 3
TM_MAX = 512  # rows per grid step; (512,128) f32 tiles double-buffer comfortably in VMEM


def _round_up(a, m):
    return ((a + m - 1) // m) * m


def pendulum_encoder_kernel(x_ref, w_ref, b_ref, o_ref):
    # Layer 1: Linear(40 -> 20) + tanh   (on zero-padded 128-lane tiles)
    h = jnp.dot(x_ref[...], w_ref[:, 0 * LANE:1 * LANE],
                preferred_element_type=jnp.float32) + b_ref[:, 0 * LANE:1 * LANE]
    h = jnp.tanh(h)
    # Layer 2: Linear(20 -> 10) + tanh
    h = jnp.dot(h, w_ref[:, 1 * LANE:2 * LANE],
                preferred_element_type=jnp.float32) + b_ref[:, 1 * LANE:2 * LANE]
    h = jnp.tanh(h)
    # Layer 3: Linear(10 -> 2), no activation
    out = jnp.dot(h, w_ref[:, 2 * LANE:3 * LANE],
                  preferred_element_type=jnp.float32) + b_ref[:, 2 * LANE:3 * LANE]
    o_ref[...] = out.astype(o_ref.dtype)


def pack_params(params):
    """Pack [(W_t(in,out), b(1,out))]*3 into one lane-dense weight slab and one
    bias slab, zero-padded so padding lanes stay exactly zero through the net."""
    w_slab = jnp.zeros((LANE, N_LAYERS * LANE), jnp.float32)
    b_slab = jnp.zeros((1, N_LAYERS * LANE), jnp.float32)
    for k, (w, b) in enumerate(params):
        fin, fout = w.shape
        w_slab = w_slab.at[:fin, k * LANE:k * LANE + fout].set(w)
        b_slab = b_slab.at[:, k * LANE:k * LANE + fout].set(b.reshape(1, fout))
    return w_slab, b_slab


def pendulum_encoder_forward(x1, x2, params):
    """x1: (N, A, B1), x2: (N, A, B2) with A*(B1+B2) == 40. Returns (N, 2)."""
    # Module plumbing: concat along last dim, flatten dims 1..2.
    x = jnp.concatenate((x1, x2), axis=-1)
    x = x.reshape(x.shape[0], -1)
    n, d_in = x.shape
    d_out = params[-1][0].shape[1]

    # Row tiling: sublane-align, then pick a tile and pad rows to a multiple of it.
    tm = min(_round_up(n, 8), TM_MAX)
    n_pad = _round_up(n, tm)
    x_pad = jnp.zeros((n_pad, LANE), jnp.float32).at[:n, :d_in].set(x)

    w_slab, b_slab = pack_params(params)

    dims = [d_in] + [w.shape[1] for w, _ in params]
    flops = 2 * n * sum(dims[i] * dims[i + 1] for i in range(len(dims) - 1))
    transcendentals = n * sum(dims[1:-1])  # tanh after fc1 and fc2 only
    bytes_accessed = 4 * (x_pad.size + w_slab.size + b_slab.size + n_pad * LANE)

    grid = (n_pad // tm,)
    out_pad = pl.pallas_call(
        pendulum_encoder_kernel,
        out_shape=jax.ShapeDtypeStruct((n_pad, LANE), jnp.float32),
        grid=grid,
        in_specs=[
            pl.BlockSpec((tm, LANE), lambda i: (i, 0)),                 # x row tile
            pl.BlockSpec((LANE, N_LAYERS * LANE), lambda i: (0, 0)),    # weight slab (resident)
            pl.BlockSpec((1, N_LAYERS * LANE), lambda i: (0, 0)),       # bias slab (resident)
        ],
        out_specs=pl.BlockSpec((tm, LANE), lambda i: (i, 0)),
        compiler_params=pltpu.CompilerParams(
            dimension_semantics=("parallel",)),
        cost_estimate=pl.CostEstimate(
            flops=flops,
            transcendentals=transcendentals,
            bytes_accessed=bytes_accessed),
    )(x_pad, w_slab, b_slab)

    return out_pad[:n, :d_out]


def init_params(key):
    """PyTorch-style nn.Linear init. Stored transposed: (in, out), bias (1, out)."""
    dims = [40, 20, 10, 2]
    params = []
    for i in range(len(dims) - 1):
        fan_in, fan_out = dims[i], dims[i + 1]
        key, kw, kb = jax.random.split(key, 3)
        bound = 1.0 / jnp.sqrt(fan_in)
        w_t = jax.random.uniform(kw, (fan_in, fan_out), jnp.float32, -bound, bound)
        b = jax.random.uniform(kb, (1, fan_out), jnp.float32, -bound, bound)
        params.append((w_t, b))
    return params


def reference_forward(x1, x2, params):
    x = jnp.concatenate((x1, x2), axis=-1)
    x = x.reshape(x.shape[0], -1)
    h = jnp.tanh(x @ params[0][0] + params[0][1])
    h = jnp.tanh(h @ params[1][0] + params[1][1])
    return h @ params[2][0] + params[2][1]


if __name__ == "__main__":
    # Small shapes consistent with the module: cat(-1) then flatten(1,2) -> 40 feats.
    n_rows = 2
    key = jax.random.PRNGKey(0)
    key, k1, k2 = jax.random.split(key, 3)
    x1 = jax.random.normal(k1, (n_rows, 2, 16), jnp.float32)   # (N, 2, 16)
    x2 = jax.random.normal(k2, (n_rows, 2, 4), jnp.float32)    # (N, 2, 4)

    params = init_params(key)

    out = pendulum_encoder_forward(x1, x2, params)
    out = jax.block_until_ready(out)

    ref = reference_forward(x1, x2, params)
    assert out.shape == (n_rows, 2), out.shape
    assert jnp.allclose(out, ref, atol=1e-5, rtol=1e-5), jnp.abs(out - ref).max()

    print("KERNEL_OK")
</pallas_src>

<mosaic_0001>
module attributes {stable_mosaic.version = 11 : i64} {
  func.func @pendulum_encoder_kernel(%arg0: i32, %arg1: memref<8x128xf32, #tpu.memory_space<vmem>>, %arg2: memref<128x384xf32, #tpu.memory_space<vmem>>, %arg3: memref<1x384xf32, #tpu.memory_space<vmem>>, %arg4: memref<8x128xf32, #tpu.memory_space<vmem>>) attributes {dimension_semantics = [#tpu.dimension_semantics<parallel>], iteration_bounds = array<i64: 1>, scalar_prefetch = 0 : i64, scratch_operands = 0 : i64, tpu.core_type = #tpu.core_type<tc>, window_params = [{transform_indices = @transform_0, window_bounds = array<i64: 8, 128>}, {pipeline_mode = #tpu.pipeline_mode<synchronous>, transform_indices = @transform_1, window_bounds = array<i64: 128, 384>}, {pipeline_mode = #tpu.pipeline_mode<synchronous>, transform_indices = @transform_2, window_bounds = array<i64: 1, 384>}, {transform_indices = @transform_3, window_bounds = array<i64: 8, 128>}]} {
    %c0 = arith.constant 0 : index
    %c0_0 = arith.constant 0 : index
    %0 = vector.load %arg1[%c0, %c0_0] : memref<8x128xf32, #tpu.memory_space<vmem>>, vector<8x128xf32>
    %c0_1 = arith.constant 0 : index
    %c0_2 = arith.constant 0 : index
    %1 = vector.load %arg2[%c0_1, %c0_2] : memref<128x384xf32, #tpu.memory_space<vmem>>, vector<128x128xf32>
    %cst = arith.constant dense<0.000000e+00> : vector<8x128xf32>
    %2 = tpu.matmul %0, %1, %cst {dimension_numbers = #tpu.dot_dimension_numbers<[1], [0], [0], [1], [0, 0, 1, 1], [], []>} : vector<8x128xf32>, vector<128x128xf32>, vector<8x128xf32> -> vector<8x128xf32>
    %c0_3 = arith.constant 0 : index
    %c0_4 = arith.constant 0 : index
    %3 = vector.load %arg3[%c0_3, %c0_4] : memref<1x384xf32, #tpu.memory_space<vmem>>, vector<1x128xf32>
    %4 = vector.broadcast %3 : vector<1x128xf32> to vector<8x128xf32>
    %5 = arith.addf %2, %4 : vector<8x128xf32>
    %6 = math.tanh %5 : vector<8x128xf32>
    %c0_5 = arith.constant 0 : index
    %c128 = arith.constant 128 : index
    %7 = vector.load %arg2[%c0_5, %c128] : memref<128x384xf32, #tpu.memory_space<vmem>>, vector<128x128xf32>
    %cst_6 = arith.constant dense<0.000000e+00> : vector<8x128xf32>
    %8 = tpu.matmul %6, %7, %cst_6 {dimension_numbers = #tpu.dot_dimension_numbers<[1], [0], [0], [1], [0, 0, 1, 1], [], []>} : vector<8x128xf32>, vector<128x128xf32>, vector<8x128xf32> -> vector<8x128xf32>
    %c0_7 = arith.constant 0 : index
    %c128_8 = arith.constant 128 : index
    %9 = vector.load %arg3[%c0_7, %c128_8] : memref<1x384xf32, #tpu.memory_space<vmem>>, vector<1x128xf32>
    %10 = vector.broadcast %9 : vector<1x128xf32> to vector<8x128xf32>
    %11 = arith.addf %8, %10 : vector<8x128xf32>
    %12 = math.tanh %11 : vector<8x128xf32>
    %c0_9 = arith.constant 0 : index
    %c256 = arith.constant 256 : index
    %13 = vector.load %arg2[%c0_9, %c256] : memref<128x384xf32, #tpu.memory_space<vmem>>, vector<128x128xf32>
    %cst_10 = arith.constant dense<0.000000e+00> : vector<8x128xf32>
    %14 = tpu.matmul %12, %13, %cst_10 {dimension_numbers = #tpu.dot_dimension_numbers<[1], [0], [0], [1], [0, 0, 1, 1], [], []>} : vector<8x128xf32>, vector<128x128xf32>, vector<8x128xf32> -> vector<8x128xf32>
    %c0_11 = arith.constant 0 : index
    %c256_12 = arith.constant 256 : index
    %15 = vector.load %arg3[%c0_11, %c256_12] : memref<1x384xf32, #tpu.memory_space<vmem>>, vector<1x128xf32>
    %16 = vector.broadcast %15 : vector<1x128xf32> to vector<8x128xf32>
    %17 = arith.addf %14, %16 : vector<8x128xf32>
    %c0_13 = arith.constant 0 : index
    %c0_14 = arith.constant 0 : index
    %18 = vector.load %arg4[%c0_13, %c0_14] : memref<8x128xf32, #tpu.memory_space<vmem>>, vector<8x128xf32>
    tpu.vector_store %arg4[%c0_13, %c0_14], %17 {strides = array<i32>} : memref<8x128xf32, #tpu.memory_space<vmem>>, vector<8x128xf32>,
    return
  }
  func.func @transform_0(%arg0: i32) -> (i32, i32) {
    %c0_i32 = arith.constant 0 : i32
    %c0_i32_0 = arith.constant 0 : i32
    return %arg0, %c0_i32 : i32, i32
  }
  func.func @transform_1(%arg0: i32) -> (i32, i32) {
    %c0_i32 = arith.constant 0 : i32
    %c0_i32_0 = arith.constant 0 : i32
    %c0_i32_1 = arith.constant 0 : i32
    return %c0_i32, %c0_i32_0 : i32, i32
  }
  func.func @transform_2(%arg0: i32) -> (i32, i32) {
    %c0_i32 = arith.constant 0 : i32
    %c0_i32_0 = arith.constant 0 : i32
    %c0_i32_1 = arith.constant 0 : i32
    return %c0_i32, %c0_i32_0 : i32, i32
  }
  func.func @transform_3(%arg0: i32) -> (i32, i32) {
    %c0_i32 = arith.constant 0 : i32
    %c0_i32_0 = arith.constant 0 : i32
    return %arg0, %c0_i32 : i32, i32
  }
}

</mosaic_0001>

<bundles_post_ra>
// kernel: tpu_custom_call.1
= control target key start
LH: loop header
LB: loop body
LE: loop exit
PB: predicated region body
PF: predicated region fallthrough
CT: control target
= control target key end

     0   :  { %8 = vsyncpa [#allocation3], 0  ;;  %s765_s0 = inlined_call_operand.hbm [shape: f32[8,128], index: 0, kind: input, shape index: {}]   ;;  %s766_s1 = inlined_call_operand.hbm [shape: f32[128,384], index: 1, kind: input, shape index: {}]   ;;  %s767_s2 = inlined_call_operand.vmem [shape: f32[1,384], index: 2, kind: input, shape index: {}]   ;;  %s768_s3 = inlined_call_operand.hbm [shape: f32[8,128], index: 3, kind: output, shape index: {}]  }
   0x1   :  { %9 = vsyncpa [#allocation6], 0 }
   0x2   :  { %10 = vsyncpa [#allocation4], 0  ;;  %s655_s12 = smov [#allocation2]   ;;  %s656_s14 = smov [#allocation5]  }
   0x3   :  { %s17_s13 = sshll.u32 %s655_s12, 4  ;;  %s26_s15 = sshll.u32 %s656_s14, 4  ;;  %s18_s13 = int_to_ptr.vmem [resolvable:$true] %s17_s13  ;;  %s683_s15 = int_to_ptr.vmem [resolvable:$true] %s26_s15 }
   0x4   :  { %s583_s18 = scalar_lea.hbm %s765_s0, 128 }
   0x5   :  { %p584_p0 = scmp.ne.s32.totalorder %s765_s0, %s583_s18  ;;  %p587_p1 = scmp.lt.u32.totalorder %s583_s18, %s765_s0 }
   0x7   :  { %p589_p2 = pnand %p587_p1, %p584_p0 }
   0x9   :  { %592 = shalt.err (!%p589_p2)
}
   0xa   :  { %s593_s23 = scalar_lea.vmem %s18_s13, 128  ;;  %p598_p4 = scmp.lt.s32.totalorder %s18_s13, %s18_s13 }
   0xb   :  { %p594_p3 = scmp.ne.s32.totalorder %s18_s13, %s593_s23  ;;  %p599_p5 = scmp.lt.s32.totalorder %s593_s23, %s593_s23 }
   0xd   :  { %p600_p6 = por %p599_p5, %p598_p4 }
   0xf   :  { %p601_p7 = pnand %p600_p6, %p594_p3 }
  0x11   :  { %604 = shalt.err (!%p601_p7)
}
  0x12   :  { %20 = dma.hbm_to_vmem [thread:$0]  %s765_s0, 128, %s18_s13, [#allocation3]  }
  0x13   :  { %s605_s28 = scalar_lea.hbm %s766_s1, 6144 }
  0x14   :  { %p606_p8 = scmp.ne.s32.totalorder %s766_s1, %s605_s28  ;;  %p609_p9 = scmp.lt.u32.totalorder %s605_s28, %s766_s1 }
  0x16   :  { %p611_p10 = pnand %p609_p9, %p606_p8 }
  0x18   :  { %614 = shalt.err (!%p611_p10)
}
  0x19   :  { %s615_s6 = scalar_lea.vmem %s683_s15, 6144  ;;  %p620_p12 = scmp.lt.s32.totalorder %s683_s15, %s683_s15 }
  0x1a   :  { %p616_p11 = scmp.ne.s32.totalorder %s683_s15, %s615_s6  ;;  %p621_p13 = scmp.lt.s32.totalorder %s615_s6, %s615_s6 }
  0x1c   :  { %p622_p0 = por %p621_p13, %p620_p12 }
  0x1e   :  { %p623_p1 = pnand %p622_p0, %p616_p11 }
  0x20   :  { %626 = shalt.err (!%p623_p1)
}
  0x21   :  { %s657_s0 = smov 384   ;;  %s658_s7 = smov 24  }
  0x22   :  { %32 = dma.hbm_to_vmem [thread:$0]  %s766_s1, 6144, %s683_s15, [#allocation6], %s657_s0, %s657_s0, %s658_s7  }
  0x23   :  { %649 = dma.done.wait [#allocation3], 128  }
  0x24   :  { %650 = vsyncadd [#allocation3], 4294967168 }
  0x25   :  { %651 = dma.done.wait [#allocation6], 6144  }
  0x26   :  { %652 = vsyncadd [#allocation6], 4294961152  ;;  %v659_v0 = vmov 0.0|0.0   ;;  %vm660_vm0 = vmmov 0   ;;  %v661_v1 = vmov 0.0   ;;  %v42_v2 = vld [vmem:[#allocation5] sm:$0xff] }
  0x27   :  { %499 = vmatprep.subr.bf16.mxu0 %v659_v0  ;;  %426 = vmatprep.mubr.msk.f32.mxu0 %vm660_vm0, %v661_v1  ;;  %v43_v3 = vld [vmem:[#allocation5 + $0x18] sm:$0xff]  ;;  %v44_v4 = vld [vmem:[#allocation5 + $0x30] sm:$0xff]  ;;  %v45_v6 = vld [vmem:[#allocation5 + $0x48] sm:$0xff]  ;;  %s662_s15 = smov [#allocation7]  }
  0x28   :  { %523 = vmatprep.subr.bf16.mxu1 %v659_v0  ;;  %461 = vmatprep.mubr.msk.f32.mxu1 %vm660_vm0, %v661_v1  ;;  %v500_v5 = vpack.c.bf16 %v43_v3, %v42_v2  ;;  %v503_v7 = vpack.c.bf16 %v45_v6, %v44_v4  ;;  %v46_v8 = vld [vmem:[#allocation5 + $0x60] sm:$0xff]  ;;  %v47_v9 = vld [vmem:[#allocation5 + $0x78] sm:$0xff]  ;;  %v136_v10 = vld [vmem:[#allocation5 + $0x8] sm:$0xff]  ;;  %s330_s16 = sshll.u32 %s662_s15, 4  ;;  %s331_s16 = int_to_ptr.vmem [resolvable:$true] %s330_s16 }
  0x29   :  { %v137_v11 = vld [vmem:[#allocation5 + $0x20] sm:$0xff]  ;;  %v138_v12 = vld [vmem:[#allocation5 + $0x38] sm:$0xff]  ;;  %v139_v13 = vld [vmem:[#allocation5 + $0x50] sm:$0xff]  ;;  %v506_v14 = vpack.c.bf16 %v47_v9, %v46_v8  ;;  %s627_s17 = scalar_lea.vmem %s331_s16, 128  ;;  %p632_p3 = scmp.lt.s32.totalorder %s331_s16, %s331_s16 }
  0x2a   :  { %501 = vmatpush3.bf16.msra.mxu0 %v500_v5  ;;  %v524_v15 = vpack.c.bf16 %v137_v11, %v136_v10  ;;  %v48_v16 = vld [vmem:[#allocation5 + $0x90] sm:$0xff]  ;;  %v49_v17 = vld [vmem:[#allocation5 + $0xa8] sm:$0xff]  ;;  %v527_v18 = vpack.c.bf16 %v139_v13, %v138_v12  ;;  %v141_v20 = vld [vmem:[#allocation5 + $0x80] sm:$0xff]  ;;  %p628_p2 = scmp.ne.s32.totalorder %s331_s16, %s627_s17  ;;  %p633_p4 = scmp.lt.s32.totalorder %s627_s17, %s627_s17 }
  0x2b   :  { %502 = vmatprep.subr.bf16.mxu0 %v659_v0  ;;  %v140_v19 = vld [vmem:[#allocation5 + $0x68] sm:$0xff]  ;;  %v509_v21 = vpack.c.bf16 %v49_v17, %v48_v16  ;;  %v50_v22 = vld [vmem:[#allocation5 + $0xc0] sm:$0xff]  ;;  %v51_v23 = vld [vmem:[#allocation5 + $0xd8] sm:$0xff] }
  0x2c   :  { %525 = vmatpush3.bf16.msra.mxu1 %v524_v15  ;;  %v530_v24 = vpack.c.bf16 %v141_v20, %v140_v19  ;;  %v142_v25 = vld [vmem:[#allocation5 + $0x98] sm:$0xff]  ;;  %v143_v26 = vld [vmem:[#allocation5 + $0xb0] sm:$0xff]  ;;  %v512_v27 = vpack.c.bf16 %v51_v23, %v50_v22  ;;  %v53_v29 = vld [vmem:[#allocation5 + $0x108] sm:$0xff]  ;;  %p634_p5 = por %p633_p4, %p632_p3 }
  0x2d   :  { %526 = vmatprep.subr.bf16.mxu1 %v659_v0  ;;  %v52_v28 = vld [vmem:[#allocation5 + $0xf0] sm:$0xff]  ;;  %v533_v30 = vpack.c.bf16 %v143_v26, %v142_v25  ;;  %v144_v31 = vld [vmem:[#allocation5 + $0xc8] sm:$0xff]  ;;  %v145_v32 = vld [vmem:[#allocation5 + $0xe0] sm:$0xff] }
  0x2e   :  { %504 = vmatpush3.bf16.msra.mxu0 %v503_v7  ;;  %v515_v33 = vpack.c.bf16 %v53_v29, %v52_v28  ;;  %v54_v34 = vld [vmem:[#allocation5 + $0x120] sm:$0xff]  ;;  %v55_v35 = vld [vmem:[#allocation5 + $0x138] sm:$0xff]  ;;  %v536_v36 = vpack.c.bf16 %v145_v32, %v144_v31  ;;  %v56_v38 = vld [vmem:[#allocation5 + $0x150] sm:$0xff]  ;;  %p635_p6 = pnand %p634_p5, %p628_p2 }
  0x2f   :  { %505 = vmatprep.subr.bf16.mxu0 %v659_v0  ;;  %v518_v37 = vpack.c.bf16 %v55_v35, %v54_v34  ;;  %v57_v39 = vld [vmem:[#allocation5 + $0x168] sm:$0xff]  ;;  %v41_v41 = vld [vmem:[#allocation2] sm:$0xff]  ;;  %v147_v43 = vld [vmem:[#allocation5 + $0x110] sm:$0xff] }
  0x30   :  { %528 = vmatpush3.bf16.msra.mxu1 %v527_v18  ;;  %v521_v40 = vpack.c.bf16 %v57_v39, %v56_v38  ;;  %v146_v42 = vld [vmem:[#allocation5 + $0xf8] sm:$0xff]  ;;  %v148_v45 = vld [vmem:[#allocation5 + $0x128] sm:$0xff]  ;;  %v149_v46 = vld [vmem:[#allocation5 + $0x140] sm:$0xff] }
  0x31   :  { %529 = vmatprep.subr.bf16.mxu1 %v659_v0  ;;  %v539_v44 = vpack.c.bf16 %v147_v43, %v146_v42  ;;  %v542_v47 = vpack.c.bf16 %v149_v46, %v148_v45  ;;  %v150_v48 = vld [vmem:[#allocation5 + $0x158] sm:$0xff]  ;;  %v151_v49 = vld [vmem:[#allocation5 + $0x170] sm:$0xff]  ;;  %v231_v52 = vld [vmem:[#allocation5 + $0x28] sm:$0xff] }
  0x32   :  { %507 = vmatpush3.bf16.msra.mxu0 %v506_v14  ;;  %v545_v50 = vpack.c.bf16 %v151_v49, %v150_v48  ;;  %v230_v51 = vld [vmem:[#allocation5 + $0x10] sm:$0xff]  ;;  %v232_v53 = vld [vmem:[#allocation5 + $0x40] sm:$0xff]  ;;  %v233_v55 = vld [vmem:[#allocation5 + $0x58] sm:$0xff] }
  0x33   :  { %508 = vmatprep.subr.bf16.mxu0 %v659_v0  ;;  %v548_v54 = vpack.c.bf16 %v231_v52, %v230_v51  ;;  %v551_v56 = vpack.c.bf16 %v233_v55, %v232_v53  ;;  %v234_v57 = vld [vmem:[#allocation5 + $0x70] sm:$0xff]  ;;  %v235_v58 = vld [vmem:[#allocation5 + $0x88] sm:$0xff]  ;;  %v236_v60 = vld [vmem:[#allocation5 + $0xa0] sm:$0xff] }
  0x34   :  { %531 = vmatpush3.bf16.msra.mxu1 %v530_v24  ;;  %v554_v59 = vpack.c.bf16 %v235_v58, %v234_v57  ;;  %v237_v61 = vld [vmem:[#allocation5 + $0xb8] sm:$0xff]  ;;  %v238_v63 = vld [vmem:[#allocation5 + $0xd0] sm:$0xff]  ;;  %v240_v8 = vld [vmem:[#allocation5 + $0x100] sm:$0xff] }
  0x35   :  { %532 = vmatprep.subr.bf16.mxu1 %v659_v0  ;;  %v557_v62 = vpack.c.bf16 %v237_v61, %v236_v60  ;;  %v340_v3 = vld [vmem:[%s767_s2] ss:$0 sm:$0xff]  ;;  %v242_v11 = vld [vmem:[#allocation5 + $0x130] sm:$0xff]  ;;  %v243_v12 = vld [vmem:[#allocation5 + $0x148] sm:$0xff] }
  0x36   :  { %510 = vmatpush3.bf16.msra.mxu0 %v509_v21  ;;  %v241_v9 = vld [vmem:[#allocation5 + $0x118] sm:$0xff]  ;;  %v566_v13 = vpack.c.bf16 %v243_v12, %v242_v11  ;;  %v244_v14 = vld [vmem:[#allocation5 + $0x160] sm:$0xff] }
  0x37   :  { %511 = vmatprep.subr.bf16.mxu0 %v659_v0  ;;  %v563_v10 = vpack.c.bf16 %v241_v9, %v240_v8  ;;  %v245_v15 = vld [vmem:[#allocation5 + $0x178] sm:$0xff] }
  0x38   :  { %534 = vmatpush3.bf16.msra.mxu1 %v533_v30  ;;  %v569_v16 = vpack.c.bf16 %v245_v15, %v244_v14  ;;  %v341_v17 = vld [vmem:[%s767_s2 + $0x1] ss:$0 sm:$0xff]  ;;  %v342_v22 = vld [vmem:[%s767_s2 + $0x2] ss:$0 sm:$0xff] }
  0x39   :  { %535 = vmatprep.subr.bf16.mxu1 %v659_v0 }
  0x3a   :  { %513 = vmatpush3.bf16.msra.mxu0 %v512_v27 }
  0x3b   :  { %514 = vmatprep.subr.bf16.mxu0 %v659_v0 }
  0x3c   :  { %537 = vmatpush3.bf16.msra.mxu1 %v536_v36 }
  0x3d   :  { %538 = vmatprep.subr.bf16.mxu1 %v659_v0 }
  0x3e   :  { %516 = vmatpush3.bf16.msra.mxu0 %v515_v33 }
  0x3f   :  { %517 = vmatprep.subr.bf16.mxu0 %v659_v0 }
  0x40   :  { %540 = vmatpush3.bf16.msra.mxu1 %v539_v44 }
  0x41   :  { %541 = vmatprep.subr.bf16.mxu1 %v659_v0 }
  0x42   :  { %519 = vmatpush3.bf16.msra.mxu0 %v518_v37 }
  0x43   :  { %520 = vmatprep.subr.bf16.mxu0 %v659_v0 }
  0x44   :  { %543 = vmatpush3.bf16.msra.mxu1 %v542_v47 }
  0x45   :  { %544 = vmatprep.subr.bf16.mxu1 %v659_v0 }
  0x46   :  { %522 = vmatpush3.bf16.msra.mxu0 %v521_v40 }
  0x47   :  { %547 = vmatprep.subr.bf16.mxu0 %v659_v0 }
  0x48   :  { %546 = vmatpush3.bf16.msra.mxu1 %v545_v50 }
  0x49   :  { %427 = vmatmul.mubr.f32.vlgmr.msra.gmra.mrb[0].mxu0 %v41_v41 }
  0x4a   :  { %496 = vmatprep.mubr.msk.f32.mxu0 %vm660_vm0, %v661_v1  ;;  %549 = vmatpush3.bf16.msra.mxu0 %v548_v54  ;;  %v239_v1 = vld [vmem:[#allocation5 + $0xe8] sm:$0xff] }
  0x4b   :  { %550 = vmatprep.subr.bf16.mxu0 %v659_v0  ;;  %v560_v2 = vpack.c.bf16 %v239_v1, %v238_v63 }
  0x4e   :  { %552 = vmatpush3.bf16.msra.mxu0 %v551_v56 }
  0x4f   :  { %553 = vmatprep.subr.bf16.mxu0 %v659_v0 }
  0x52   :  { %555 = vmatpush3.bf16.msra.mxu0 %v554_v59 }
  0x53   :  { %556 = vmatprep.subr.bf16.mxu0 %v659_v0 }
  0x56   :  { %558 = vmatpush3.bf16.msra.mxu0 %v557_v62 }
  0x57   :  { %559 = vmatprep.subr.bf16.mxu0 %v659_v0 }
  0x5a   :  { %561 = vmatpush3.bf16.msra.mxu0 %v560_v2 }
  0x5b   :  { %562 = vmatprep.subr.bf16.mxu0 %v659_v0 }
  0x5e   :  { %564 = vmatpush3.bf16.msra.mxu0 %v563_v10 }
  0x5f   :  { %565 = vmatprep.subr.bf16.mxu0 %v659_v0 }
  0x62   :  { %567 = vmatpush3.bf16.msra.mxu0 %v566_v13 }
  0x63   :  { %568 = vmatprep.subr.bf16.mxu0 %v659_v0 }
  0x66   :  { %570 = vmatpush3.bf16.msra.mxu0 %v569_v16 }
 0x11c   :  { %v131_v4 = vpop.f32.mrb[0].mxu0 }
 0x11d   :  { %v132_v5 = vadd.f32 %v340_v3, %v131_v4  ;;  %v428_v6 = vpop.f32.mrb[1].mxu0 }
 0x11f   :  { %579 = vtanh.f32 %v132_v5 }
 0x129   :  { %v580_v7 = vpop.eup %579 }
 0x12a   :  { %462 = vmatmul.mubr.f32.vlgmr.msra.gmra.mrb[0].mxu1 %v580_v7 }
 0x1fd   :  { %v225_v18 = vpop.f32.mrb[0].mxu1 }
 0x1fe   :  { %v226_v19 = vadd.f32 %v341_v17, %v225_v18  ;;  %v463_v20 = vpop.f32.mrb[1].mxu1 }
 0x200   :  { %581 = vtanh.f32 %v226_v19 }
 0x20a   :  { %v582_v21 = vpop.eup %581 }
 0x20b   :  { %497 = vmatmul.mubr.f32.vlgmr.msra.gmra.mrb[2].mxu0 %v582_v21 }
 0x2de   :  { %v319_v23 = vpop.f32.mrb[2].mxu0 }
 0x2df   :  { %v320_v24 = vadd.f32 %v342_v22, %v319_v23  ;;  %v498_v0 = vpop.f32.mrb[3].mxu0 }
 0x2e1   :  { %323 = vst [vmem:[#allocation7] sm:$0xff] %v320_v24 }
 0x2e2   :  { %638 = shalt.err (!%p635_p6)
}
 0x2e3   :  { %s639_s20 = scalar_lea.hbm %s768_s3, 128 }
 0x2e4   :  { %p640_p7 = scmp.ne.s32.totalorder %s768_s3, %s639_s20  ;;  %p643_p8 = scmp.lt.u32.totalorder %s639_s20, %s768_s3 }
 0x2e6   :  { %p645_p9 = pnand %p643_p8, %p640_p7 }
 0x2e8   :  { %648 = shalt.err (!%p645_p9)
}
 0x2e9   :  { %333 = dma.vmem_to_hbm [thread:$0]  %s331_s16, 128, %s768_s3, [#allocation4]  }
 0x2ea   :  { %653 = dma.done.wait [#allocation4], 128  }
 0x2eb   :  { %654 = vsyncadd [#allocation4], 4294967168 }
 0x2ec   :  { %337 = vsyncpa [#allocation3], 1 }
 0x2ed   :  { %338 = vsyncpa [#allocation6], 1 }
 0x2ee   :  { %339 = vsyncpa [#allocation4], 1 }

</bundles_post_ra>
